<compile_context>
chip_gen: v7x
topology: tpu7x:2x2x1
jax: 0.10.0
libtpu: 0.0.40
codegen_flags: <defaults>
</compile_context>

<pallas_src>
from functools import partial

import jax
import jax.numpy as jnp
import numpy as np
from jax import lax
from jax.experimental import pallas as pl
from jax.experimental.pallas import tpu as pltpu

LANE = 128


def _lane_pad(n: int) -> int:
    """Round up to the 128-lane vreg width (lane-dense layouts)."""
    return ((n + LANE - 1) // LANE) * LANE


def attention_head_kernel(x_ref, w_ref, b_ref, o_ref, *, batch_block, seq_len, hs_pad):
    """One grid step handles `batch_block` batches collapsed into the M dim.

    x_ref : (batch_block*seq_len, C)       activations (f32 or bf16)
    w_ref : (C, 3*hs_pad)                  fused/padded  Wq | Wk*scale | Wv   (resident)
    b_ref : (1, 3*hs_pad)                  fused/padded  bq | bk*scale | bv   (f32, resident)
    o_ref : (batch_block*seq_len, hs_pad)  lane-dense output slab
    """
    # Fused q/k/v projection: ONE wide MXU pass over all batch_block*seq_len rows.
    qkv = jnp.dot(x_ref[...], w_ref[...],
                  preferred_element_type=jnp.float32) + b_ref[...]       # (bb*T, 3*hs_pad)

    # Reference returns `wei @ v` (softmax/dropout are dead code), so the product
    # reassociates exactly: (q @ k^T * s) @ v == q @ ((s*k)^T @ v).
    # The n_embd**-0.5 scale is already folded into the k segment of w/b, so the
    # (T, T) `wei` tile is never materialized and no per-step scale multiply runs.
    # TODO(synk): training-mode attention dropout not implemented (identity in
    # eval mode, and it only touches the discarded softmax output anyway).
    for bi in range(batch_block):                                        # static unroll; bb is small
        rows = slice(bi * seq_len, (bi + 1) * seq_len)                   # sublane-aligned (T multiple of 8)
        q = qkv[rows, 0 * hs_pad:1 * hs_pad]                             # lane-aligned 128-offset slices
        k = qkv[rows, 1 * hs_pad:2 * hs_pad]
        v = qkv[rows, 2 * hs_pad:3 * hs_pad]
        # k^T @ v without materializing a transposed k (contract over the T axis).
        kv = lax.dot_general(k, v, (((0,), (0,)), ((), ())),
                             preferred_element_type=jnp.float32)         # (hs_pad, hs_pad)
        o_ref[pl.ds(bi * seq_len, seq_len), :] = jnp.dot(
            q, kv, preferred_element_type=jnp.float32).astype(o_ref.dtype)


def attention_head(x, wqkv, bqkv, head_size, *, batch_block=None, compute_dtype=None):
    """x: (B, T, C).  wqkv/bqkv: fused + lane-padded params from fuse_qkv_padded."""
    B, T, C = x.shape
    hs_pad = wqkv.shape[-1] // 3
    out_dtype = x.dtype

    if compute_dtype is not None:           # e.g. bf16: halves HBM->VMEM bytes (mem-bound kernel)
        x = x.astype(compute_dtype)
        wqkv = wqkv.astype(compute_dtype)

    bb = B if batch_block is None else min(batch_block, B)
    assert B % bb == 0, "batch_block must divide B"
    grid = (B // bb,)

    x2 = x.reshape(B * T, C)                # collapse batch into the matmul M dimension (free reshape)

    # TODO(synk): for very long T on v7x (64 MiB VMEM) add a T-tiling grid axis
    # that accumulates kv = k^T v into a VMEM scratch; unnecessary at these sizes.
    out2 = pl.pallas_call(
        partial(attention_head_kernel, batch_block=bb, seq_len=T, hs_pad=hs_pad),
        out_shape=jax.ShapeDtypeStruct((B * T, hs_pad), jnp.float32),
        grid_spec=pltpu.PrefetchScalarGridSpec(
            num_scalar_prefetch=0,
            grid=grid,
            in_specs=[
                pl.BlockSpec((bb * T, C), lambda i: (i, 0)),        # activations (streamed)
                pl.BlockSpec((C, 3 * hs_pad), lambda i: (0, 0)),    # fused weights (resident)
                pl.BlockSpec((1, 3 * hs_pad), lambda i: (0, 0)),    # fused bias   (resident)
            ],
            out_specs=pl.BlockSpec((bb * T, hs_pad), lambda i: (i, 0)),
        ),
        compiler_params=pltpu.CompilerParams(
            dimension_semantics=("parallel",),      # batch tiles split across v7x TensorCores
            vmem_limit_bytes=32 * 1024 * 1024,      # tiny footprint; safe on v5e/v6e/v7x
        ),
    )(x2, wqkv, bqkv)

    # Crop the lane padding back to head_size OUTSIDE the kernel so kernel stores
    # stay unmasked / lane-dense (cheap XLA slice).
    return out2.reshape(B, T, hs_pad)[:, :, :head_size].astype(out_dtype)


def make_params(key, n_embd, head_size):
    """PyTorch-Linear-like uniform init; weights stored transposed (C, hs)."""
    C, hs = n_embd, head_size
    ks = jax.random.split(key, 6)
    bound = 1.0 / np.sqrt(C)

    def u(k, shape):
        return jax.random.uniform(k, shape, jnp.float32, -bound, bound)

    wq, wk, wv = u(ks[0], (C, hs)), u(ks[1], (C, hs)), u(ks[2], (C, hs))
    bq, bk, bv = u(ks[3], (hs,)), u(ks[4], (hs,)), u(ks[5], (hs,))
    return (wq, bq, wk, bk, wv, bv)


def fuse_qkv_padded(params, n_embd, head_size):
    """One-time host-side parameter prep:
       * concat Wq|Wk|Wv into one (C, 3*hs_pad) weight with each segment padded
         to a 128-lane boundary (lane-aligned q/k/v slices, lane-dense output),
       * fold the reference's n_embd**-0.5 scale into the k segment (exact for a
         linear op)."""
    wq, bq, wk, bk, wv, bv = params
    C, hs = n_embd, head_size
    hs_pad = _lane_pad(hs)
    scale = float(C) ** -0.5     # reference quirk: n_embd**-0.5, NOT head_size**-0.5

    def pad_w(w):
        return jnp.pad(w, ((0, 0), (0, hs_pad - hs)))

    def pad_b(b):
        return jnp.pad(b, (0, hs_pad - hs))

    wqkv = jnp.concatenate([pad_w(wq), pad_w(wk * scale), pad_w(wv)], axis=-1)        # (C, 3*hs_pad)
    bqkv = jnp.concatenate([pad_b(bq), pad_b(bk * scale), pad_b(bv)], axis=-1)[None]  # (1, 3*hs_pad)
    return wqkv, bqkv


def reference_attention_head(x, params):
    """Pure-JAX mirror of the PyTorch forward (including the wei@v quirk)."""
    wq, bq, wk, bk, wv, bv = params
    B, T, C = x.shape
    q = x @ wq + bq
    k = x @ wk + bk
    v = x @ wv + bv
    wei = jnp.einsum("btd,bsd->bts", q, k) * (float(C) ** -0.5)
    # att = softmax(wei); att = dropout(att)  -> discarded by the reference
    return jnp.einsum("bts,bsd->btd", wei, v)


if __name__ == "__main__":
    # small config consistent with the module: batch=2, seq=8, n_embd=32, head_size=8
    B, T, C, hs = 2, 8, 32, 8

    key = jax.random.PRNGKey(0)
    kx, kp = jax.random.split(key)
    x = jax.random.normal(kx, (B, T, C), jnp.float32)
    params = make_params(kp, C, hs)
    wqkv, bqkv = fuse_qkv_padded(params, C, hs)

    ref = reference_attention_head(x, params)

    # f32 path (exact within reassociation rounding)
    out = attention_head(x, wqkv, bqkv, hs)
    out = jax.block_until_ready(out)
    assert out.shape == (B, T, hs)
    np.testing.assert_allclose(np.asarray(out), np.asarray(ref), rtol=2e-5, atol=2e-5)

    # bf16-input path (halves HBM traffic; f32 accumulation) — looser tolerance
    out_bf16 = attention_head(x, wqkv, bqkv, hs, compute_dtype=jnp.bfloat16)
    out_bf16 = jax.block_until_ready(out_bf16)
    np.testing.assert_allclose(np.asarray(out_bf16), np.asarray(ref), rtol=5e-2, atol=5e-2)

    print("KERNEL_OK")
</pallas_src>

<mosaic_0001>
module attributes {stable_mosaic.version = 11 : i64} {
  func.func @attention_head_kernel(%arg0: i32, %arg1: memref<16x32xf32, #tpu.memory_space<vmem>>, %arg2: memref<32x384xf32, #tpu.memory_space<vmem>>, %arg3: memref<1x384xf32, #tpu.memory_space<vmem>>, %arg4: memref<16x128xf32, #tpu.memory_space<vmem>>) attributes {dimension_semantics = [#tpu.dimension_semantics<parallel>], iteration_bounds = array<i64: 1>, scalar_prefetch = 0 : i64, scratch_operands = 0 : i64, tpu.core_type = #tpu.core_type<tc>, window_params = [{transform_indices = @transform_0, window_bounds = array<i64: 16, 32>}, {pipeline_mode = #tpu.pipeline_mode<synchronous>, transform_indices = @transform_1, window_bounds = array<i64: 32, 384>}, {pipeline_mode = #tpu.pipeline_mode<synchronous>, transform_indices = @transform_2, window_bounds = array<i64: 1, 384>}, {transform_indices = @transform_3, window_bounds = array<i64: 16, 128>}]} {
    %c0 = arith.constant 0 : index
    %c0_0 = arith.constant 0 : index
    %0 = vector.load %arg1[%c0, %c0_0] : memref<16x32xf32, #tpu.memory_space<vmem>>, vector<16x32xf32>
    %c0_1 = arith.constant 0 : index
    %c0_2 = arith.constant 0 : index
    %1 = vector.load %arg2[%c0_1, %c0_2] : memref<32x384xf32, #tpu.memory_space<vmem>>, vector<32x384xf32>
    %cst = arith.constant dense<0.000000e+00> : vector<16x384xf32>
    %2 = tpu.matmul %0, %1, %cst {dimension_numbers = #tpu.dot_dimension_numbers<[1], [0], [0], [1], [0, 0, 1, 1], [], []>} : vector<16x32xf32>, vector<32x384xf32>, vector<16x384xf32> -> vector<16x384xf32>
    %c0_3 = arith.constant 0 : index
    %c0_4 = arith.constant 0 : index
    %3 = vector.load %arg3[%c0_3, %c0_4] : memref<1x384xf32, #tpu.memory_space<vmem>>, vector<1x384xf32>
    %4 = vector.broadcast %3 : vector<1x384xf32> to vector<16x384xf32>
    %5 = arith.addf %2, %4 : vector<16x384xf32>
    %6 = vector.extract_strided_slice %5 {offsets = [0, 0], sizes = [8, 128], strides = [1, 1]} : vector<16x384xf32> to vector<8x128xf32>
    %7 = vector.extract_strided_slice %5 {offsets = [0, 128], sizes = [8, 128], strides = [1, 1]} : vector<16x384xf32> to vector<8x128xf32>
    %8 = vector.extract_strided_slice %5 {offsets = [0, 256], sizes = [8, 128], strides = [1, 1]} : vector<16x384xf32> to vector<8x128xf32>
    %cst_5 = arith.constant dense<0.000000e+00> : vector<128x128xf32>
    %9 = tpu.matmul %7, %8, %cst_5 {dimension_numbers = #tpu.dot_dimension_numbers<[0], [0], [1], [1], [0, 1, 1, 1], [], []>} : vector<8x128xf32>, vector<8x128xf32>, vector<128x128xf32> -> vector<128x128xf32>
    %cst_6 = arith.constant dense<0.000000e+00> : vector<8x128xf32>
    %10 = tpu.matmul %6, %9, %cst_6 {dimension_numbers = #tpu.dot_dimension_numbers<[1], [0], [0], [1], [0, 0, 1, 1], [], []>} : vector<8x128xf32>, vector<128x128xf32>, vector<8x128xf32> -> vector<8x128xf32>
    %c0_7 = arith.constant 0 : index
    %c0_8 = arith.constant 0 : index
    %11 = vector.load %arg4[%c0_7, %c0_8] : memref<16x128xf32, #tpu.memory_space<vmem>>, vector<8x128xf32>
    tpu.vector_store %arg4[%c0_7, %c0_8], %10 {strides = array<i32>} : memref<16x128xf32, #tpu.memory_space<vmem>>, vector<8x128xf32>,
    %12 = vector.extract_strided_slice %5 {offsets = [8, 0], sizes = [8, 128], strides = [1, 1]} : vector<16x384xf32> to vector<8x128xf32>
    %13 = vector.extract_strided_slice %5 {offsets = [8, 128], sizes = [8, 128], strides = [1, 1]} : vector<16x384xf32> to vector<8x128xf32>
    %14 = vector.extract_strided_slice %5 {offsets = [8, 256], sizes = [8, 128], strides = [1, 1]} : vector<16x384xf32> to vector<8x128xf32>
    %cst_9 = arith.constant dense<0.000000e+00> : vector<128x128xf32>
    %15 = tpu.matmul %13, %14, %cst_9 {dimension_numbers = #tpu.dot_dimension_numbers<[0], [0], [1], [1], [0, 1, 1, 1], [], []>} : vector<8x128xf32>, vector<8x128xf32>, vector<128x128xf32> -> vector<128x128xf32>
    %cst_10 = arith.constant dense<0.000000e+00> : vector<8x128xf32>
    %16 = tpu.matmul %12, %15, %cst_10 {dimension_numbers = #tpu.dot_dimension_numbers<[1], [0], [0], [1], [0, 0, 1, 1], [], []>} : vector<8x128xf32>, vector<128x128xf32>, vector<8x128xf32> -> vector<8x128xf32>
    %c8 = arith.constant 8 : index
    %c0_11 = arith.constant 0 : index
    %17 = vector.load %arg4[%c8, %c0_11] : memref<16x128xf32, #tpu.memory_space<vmem>>, vector<8x128xf32>
    tpu.vector_store %arg4[%c8, %c0_11], %16 {strides = array<i32>} : memref<16x128xf32, #tpu.memory_space<vmem>>, vector<8x128xf32>,
    return
  }
  func.func @transform_0(%arg0: i32) -> (i32, i32) {
    %c0_i32 = arith.constant 0 : i32
    %c0_i32_0 = arith.constant 0 : i32
    return %arg0, %c0_i32 : i32, i32
  }
  func.func @transform_1(%arg0: i32) -> (i32, i32) {
    %c0_i32 = arith.constant 0 : i32
    %c0_i32_0 = arith.constant 0 : i32
    %c0_i32_1 = arith.constant 0 : i32
    return %c0_i32, %c0_i32_0 : i32, i32
  }
  func.func @transform_2(%arg0: i32) -> (i32, i32) {
    %c0_i32 = arith.constant 0 : i32
    %c0_i32_0 = arith.constant 0 : i32
    %c0_i32_1 = arith.constant 0 : i32
    return %c0_i32, %c0_i32_0 : i32, i32
  }
  func.func @transform_3(%arg0: i32) -> (i32, i32) {
    %c0_i32 = arith.constant 0 : i32
    %c0_i32_0 = arith.constant 0 : i32
    return %arg0, %c0_i32 : i32, i32
  }
}

</mosaic_0001>

<bundles_post_ra>
// kernel: tpu_custom_call.1
= control target key start
LH: loop header
LB: loop body
LE: loop exit
PB: predicated region body
PF: predicated region fallthrough
CT: control target
= control target key end

     0   :  { %8 = vsyncpa [#allocation3], 0  ;;  %s1374_s0 = inlined_call_operand.hbm [shape: f32[16,32], index: 0, kind: input, shape index: {}]   ;;  %s1375_s1 = inlined_call_operand.hbm [shape: f32[32,384], index: 1, kind: input, shape index: {}]   ;;  %s1376_s2 = inlined_call_operand.vmem [shape: f32[1,384], index: 2, kind: input, shape index: {}]   ;;  %s1377_s3 = inlined_call_operand.hbm [shape: f32[16,128], index: 3, kind: output, shape index: {}]  }
   0x1   :  { %9 = vsyncpa [#allocation6], 0 }
   0x2   :  { %10 = vsyncpa [#allocation4], 0  ;;  %s1233_s12 = smov [#allocation2]   ;;  %s1161_s16 = scalar_lea.hbm %s1374_s0, 256 }
   0x3   :  { %s16_s13 = sshll.u32 %s1233_s12, 4  ;;  %p1162_p0 = scmp.ne.s32.totalorder %s1374_s0, %s1161_s16  ;;  %s17_s13 = int_to_ptr.vmem [resolvable:$true] %s16_s13 }
   0x4   :  { %p1165_p1 = scmp.lt.u32.totalorder %s1161_s16, %s1374_s0 }
   0x6   :  { %p1167_p2 = pnand %p1165_p1, %p1162_p0 }
   0x8   :  { %1170 = shalt.err (!%p1167_p2)
}
   0x9   :  { %s1171_s21 = scalar_lea.vmem %s17_s13, 256  ;;  %p1176_p4 = scmp.lt.s32.totalorder %s17_s13, %s17_s13 }
   0xa   :  { %p1172_p3 = scmp.ne.s32.totalorder %s17_s13, %s1171_s21  ;;  %p1177_p5 = scmp.lt.s32.totalorder %s1171_s21, %s1171_s21 }
   0xc   :  { %p1178_p6 = por %p1177_p5, %p1176_p4 }
   0xe   :  { %p1179_p7 = pnand %p1178_p6, %p1172_p3 }
  0x10   :  { %1182 = shalt.err (!%p1179_p7)
}
  0x11   :  { %s1234_s22 = smov 128   ;;  %s1235_s23 = smov 8  }
  0x12   :  { %22 = dma.hbm_to_vmem [thread:$0]  %s1374_s0, 256, %s17_s13, [#allocation3], %s1234_s22, %s1234_s22, %s1235_s23  }
  0x13   :  { %s1236_s26 = smov [#allocation5]   ;;  %s1183_s30 = scalar_lea.hbm %s1375_s1, 1536 }
  0x14   :  { %s28_s27 = sshll.u32 %s1236_s26, 4  ;;  %p1184_p8 = scmp.ne.s32.totalorder %s1375_s1, %s1183_s30  ;;  %s29_s27 = int_to_ptr.vmem [resolvable:$true] %s28_s27 }
  0x15   :  { %p1187_p9 = scmp.lt.u32.totalorder %s1183_s30, %s1375_s1 }
  0x17   :  { %p1189_p10 = pnand %p1187_p9, %p1184_p8 }
  0x19   :  { %1192 = shalt.err (!%p1189_p10)
}
  0x1a   :  { %s1193_s8 = scalar_lea.vmem %s29_s27, 1536  ;;  %p1198_p12 = scmp.lt.s32.totalorder %s29_s27, %s29_s27 }
  0x1b   :  { %p1194_p11 = scmp.ne.s32.totalorder %s29_s27, %s1193_s8  ;;  %p1199_p13 = scmp.lt.s32.totalorder %s1193_s8, %s1193_s8 }
  0x1d   :  { %p1200_p0 = por %p1199_p13, %p1198_p12 }
  0x1f   :  { %p1201_p1 = pnand %p1200_p0, %p1194_p11 }
  0x21   :  { %1204 = shalt.err (!%p1201_p1)
}
  0x22   :  { %s1237_s0 = smov 384   ;;  %s1238_s9 = smov 24  }
  0x23   :  { %34 = dma.hbm_to_vmem [thread:$0]  %s1375_s1, 1536, %s29_s27, [#allocation6], %s1237_s0, %s1237_s0, %s1238_s9  }
  0x24   :  { %1227 = dma.done.wait [#allocation3], 256  }
  0x25   :  { %1228 = vsyncadd [#allocation3], 4294967040 }
  0x26   :  { %1229 = dma.done.wait [#allocation6], 1536  }
  0x27   :  { %1230 = vsyncadd [#allocation6], 4294965760  ;;  %v1239_v0 = vmov 0.0   ;;  %v46_v1 = vld [vmem:[#allocation5 + $0x8] sm:$0xff]  ;;  %v49_v2 = vld [vmem:[#allocation5 + $0x20] sm:$0xff]  ;;  %vm74_vm0 = vcmask 261120   ;;  %v59_v21 = vlaneseq }
  0x28   :  { %145 = vmatprep.mubr.f32.mxu1 %v1239_v0  ;;  %v45_v3 = vld [vmem:[#allocation5] sm:$0xff]  ;;  %v1087_v4 = vpack.c.bf16 %v49_v2, %v46_v1  ;;  %v48_v5 = vld [vmem:[#allocation5 + $0x18] sm:$0xff]  ;;  %v55_v7 = vld [vmem:[#allocation5 + $0x50] sm:$0xff]  ;;  %vm265_vm1 = vcmask 64512   ;;  %v1240_v57 = vmov 0.0|0.0   ;;  %vm1241_vm2 = vmmov 0  }
  0x29   :  { %v52_v6 = vld [vmem:[#allocation5 + $0x38] sm:$0xff]  ;;  %v1089_v8 = vpack.c.bf16 %v48_v5, %v45_v3  ;;  %v51_v10 = vld [vmem:[#allocation5 + $0x30] sm:$0xff]  ;;  %v54_v11 = vld [vmem:[#allocation5 + $0x48] sm:$0xff]  ;;  %v60_v22 = vshrl.u32 %v59_v21, 7  ;;  %1103 = vmatprep.subr.bf16.mxu0 %v1240_v57  ;;  %1023 = vmatprep.mubr.msk.f32.mxu0 %vm1241_vm2, %v1239_v0 }
  0x2a   :  { %v1091_v9 = vpack.c.bf16 %v55_v7, %v52_v6  ;;  %1088 = vmatprep.subr.bf16.mxu1 %v1087_v4  ;;  %v47_v12 = vld [vmem:[#allocation5 + $0x10] sm:$0xff]  ;;  %v50_v13 = vld [vmem:[#allocation5 + $0x28] sm:$0xff]  ;;  %v1093_v14 = vpack.c.bf16 %v54_v11, %v51_v10  ;;  %v53_v16 = vld [vmem:[#allocation5 + $0x40] sm:$0xff] }
  0x2b   :  { %1090 = vmatpush1.bf16.msra.mxu1 %v1089_v8  ;;  %v1095_v15 = vpack.c.bf16 %v50_v13, %v47_v12  ;;  %v56_v17 = vld [vmem:[#allocation5 + $0x58] sm:$0xff]  ;;  %v43_v18 = vld [vmem:[#allocation2] sm:$0xff]  ;;  %v65_v23 = vsub.s32 1, %v60_v22  ;;  %v61_v26 = vsub.s32 0, %v60_v22  ;;  %v69_v30 = vsub.s32 2, %v60_v22 }
  0x2c   :  { %1092 = vmatprep.subr.bf16.mxu1 %v1091_v9  ;;  %v1099_v19 = vpack.c.bf16 %v56_v17, %v53_v16  ;;  %v44_v20 = vld [vmem:[#allocation2 + $0x8] sm:$0xff]  ;;  %v57_v24 = vld [vmem:[%s1376_s2] sm:$0x7]  ;;  %s1242_s2 = smov [#allocation7]  }
  0x2d   :  { %v66_v25 = vrot.slane %v57_v24, %v65_v23  ;;  %v1297_v31 = vrot.slane %v57_v24, %v61_v26  ;;  %v70_v35 = vrot.slane %v57_v24, %v69_v30  ;;  %s831_s13 = sshll.u32 %s1242_s2, 4  ;;  %s832_s13 = int_to_ptr.vmem [resolvable:$true] %s831_s13 }
  0x2e   :  { %s1205_s14 = scalar_lea.vmem %s832_s13, 256  ;;  %p1210_p3 = scmp.lt.s32.totalorder %s832_s13, %s832_s13 }
  0x2f   :  { %1094 = vmatpush1.bf16.msra.mxu1 %v1093_v14  ;;  %p1206_p2 = scmp.ne.s32.totalorder %s832_s13, %s1205_s14  ;;  %p1211_p4 = scmp.lt.s32.totalorder %s1205_s14, %s1205_s14 }
  0x30   :  { %1096 = vmatprep.subr.bf16.mxu1 %v1095_v15 }
  0x31   :  { %p1212_p5 = por %p1211_p4, %p1210_p3 }
  0x32   :  { %844 = vmatmul.mubr.msk.f32.vlgmr.msra.gmra.mrb[0].mxu1 %vm74_vm0, %v43_v18 }
  0x33   :  { %1098 = vmatpush3.bf16.msra.mxu1 %v1095_v15  ;;  %151 = vmatprep.mubr.f32.mxu1 %v1239_v0  ;;  %p1213_p6 = pnand %p1212_p5, %p1206_p2 }
  0x34   :  { %1100 = vmatprep.subr.bf16.mxu1 %v1099_v19 }
  0x36   :  { %845 = vmatmul.mubr.msk.f32.gmra.mrb[2].mxu1 %vm74_vm0, %v44_v20 }
  0x37   :  { %1102 = vmatpush3.bf16.msra.mxu1 %v1099_v19  ;;  %962 = vmatprep.mubr.msk.f32.mxu1 %vm74_vm0, %v43_v18 }
  0x3a   :  { %963 = vmatmul.mubr.msk.f32.vlgmr.msra.gmra.mrb[4].mxu1 %vm74_vm0, %v44_v20 }
 0x105   :  { %v1295_v27 = vpop.f32.mrb[0].mxu1 }
 0x106   :  { %v149_v28 = vpop.f32.mrb[1].mxu1 }
 0x107   :  { %v150_v29 = vadd.f32 %v149_v28, %v66_v25 }
 0x109   :  { %233 = vxpose.xlu0.b32.start.end [1/1] (short) %v150_v29, 128  ;;  %v153_v32 = vpop.f32.mrb[2].mxu1  ;;  %v148_v29 = vadd.f32 %v1295_v27, %v1297_v31 }
 0x10a   :  { %v1300_v33 = vadd.f32 %v153_v32, %v1297_v31  ;;  %v155_v34 = vpop.f32.mrb[3].mxu1 }
 0x10b   :  { %v156_v40 = vadd.f32 %v155_v34, %v66_v25 }
 0x10d   :  { %v964_v36 = vpop.f32.mrb[4].mxu1 }
 0x10e   :  { %v1302_v37 = vadd.f32 %v964_v36, %v70_v35  ;;  %v224_v38 = vpop.f32.mrb[5].mxu1 }
 0x10f   :  { %v225_v39 = vadd.f32 %v224_v38, %v70_v35 }
 0x111   :  { %965 = vmatprep.subr.mxu1 %v225_v39 }
 0x112   :  { %966 = vmatpush3.msra.mxu1 %v225_v39 }
 0x113   :  { %1127 = vmatprep.subr.bf16.mxu1 %v1240_v57 }
 0x146   :  { %530 = vxpose.xlu0.b32.start.end [1/1] (short) %v156_v40, 128 }
 0x189   :  { %v249_v41 = vpop.trf.xlu0 }
 0x18a   :  { %967 = vmatprep.mubr.msk.f32.mxu1 %vm265_vm1, %v249_v41 }
 0x18d   :  { %v250_v42 = vpop.trf.xlu0 }
 0x18e   :  { %968 = vmatmul.mubr.msk.f32.vlgmr.msra.gmra.mrb[6].mxu1 %vm265_vm1, %v250_v42 }
 0x191   :  { %v251_v43 = vpop.trf.xlu0 }
 0x192   :  { %970 = vmatprep.mubr.msk.f32.mxu1 %vm265_vm1, %v251_v43 }
 0x195   :  { %v252_v44 = vpop.trf.xlu0 }
 0x196   :  { %971 = vmatmul.mubr.msk.f32.gmra.mrb[8].mxu1 %vm265_vm1, %v252_v44 }
 0x199   :  { %v253_v45 = vpop.trf.xlu0 }
 0x19a   :  { %973 = vmatprep.mubr.msk.f32.mxu1 %vm265_vm1, %v253_v45 }
 0x19d   :  { %v254_v46 = vpop.trf.xlu0 }
 0x19e   :  { %974 = vmatmul.mubr.msk.f32.gmra.mrb[10].mxu1 %vm265_vm1, %v254_v46 }
 0x1a1   :  { %v255_v47 = vpop.trf.xlu0 }
 0x1a2   :  { %976 = vmatprep.mubr.msk.f32.mxu1 %vm265_vm1, %v255_v47 }
 0x1a5   :  { %v256_v48 = vpop.trf.xlu0 }
 0x1a6   :  { %977 = vmatmul.mubr.msk.f32.gmra.mrb[12].mxu1 %vm265_vm1, %v256_v48 }
 0x1a9   :  { %v257_v49 = vpop.trf.xlu0 }
 0x1aa   :  { %979 = vmatprep.mubr.msk.f32.mxu1 %vm265_vm1, %v257_v49 }
 0x1ad   :  { %v258_v50 = vpop.trf.xlu0 }
 0x1ae   :  { %980 = vmatmul.mubr.msk.f32.gmra.mrb[14].mxu1 %vm265_vm1, %v258_v50 }
 0x1b1   :  { %v259_v51 = vpop.trf.xlu0 }
 0x1b2   :  { %982 = vmatprep.mubr.msk.f32.mxu1 %vm265_vm1, %v259_v51 }
 0x1b5   :  { %v260_v52 = vpop.trf.xlu0 }
 0x1b6   :  { %983 = vmatmul.mubr.msk.f32.gmra.mrb[16].mxu1 %vm265_vm1, %v260_v52 }
 0x1b9   :  { %v261_v53 = vpop.trf.xlu0 }
 0x1ba   :  { %985 = vmatprep.mubr.msk.f32.mxu1 %vm265_vm1, %v261_v53 }
 0x1bd   :  { %v262_v54 = vpop.trf.xlu0 }
 0x1be   :  { %986 = vmatmul.mubr.msk.f32.gmra.mrb[18].mxu1 %vm265_vm1, %v262_v54 }
 0x1c1   :  { %v263_v55 = vpop.trf.xlu0 }
 0x1c2   :  { %988 = vmatprep.mubr.msk.f32.mxu1 %vm265_vm1, %v263_v55 }
 0x1c5   :  { %v264_v56 = vpop.trf.xlu0 }
 0x1c6   :  { %989 = vmatmul.mubr.msk.f32.gmra.mrb[20].mxu1 %vm265_vm1, %v264_v56 }
 0x1c7   :  { %1084 = vmatprep.mubr.msk.f32.mxu1 %vm1241_vm2, %v1239_v0 }
 0x1c9   :  { %v546_v61 = vpop.trf.xlu0 }
 0x1cd   :  { %v547_v63 = vpop.trf.xlu0 }
 0x1d1   :  { %v548_v3 = vpop.trf.xlu0 }
 0x1d5   :  { %v549_v0 = vpop.trf.xlu0 }
 0x1d9   :  { %v550_v10 = vpop.trf.xlu0 }
 0x1dd   :  { %v551_v12 = vpop.trf.xlu0 }
 0x1e1   :  { %v552_v15 = vpop.trf.xlu0 }
 0x1e5   :  { %v553_v19 = vpop.trf.xlu0 }
 0x1e9   :  { %v554_v23 = vpop.trf.xlu0 }
 0x1ed   :  { %v555_v25 = vpop.trf.xlu0 }
 0x1f1   :  { %v556_v30 = vpop.trf.xlu0 }
 0x1f5   :  { %v557_v32 = vpop.trf.xlu0 }
 0x1f9   :  { %v558_v34 = vpop.trf.xlu0 }
 0x1fd   :  { %v559_v27 = vpop.trf.xlu0 }
 0x201   :  { %v560_v31 = vpop.trf.xlu0 }
 0x205   :  { %v561_v35 = vpop.trf.xlu0 }
 0x261   :  { %v969_v58 = vpop.f32.mrb[6].mxu1 }
 0x262   :  { %v380_v59 = vpop.f32.mrb[7].mxu1 }
 0x263   :  { %v1104_v60 = vpack.c.bf16 %v969_v58, %v380_v59 }
 0x265   :  { %1105 = vmatpush3.bf16.msra.mxu0 %v1104_v60 }
 0x266   :  { %1106 = vmatprep.subr.bf16.mxu0 %v1240_v57 }
 0x269   :  { %v972_v62 = vpop.f32.mrb[8].mxu1 }
 0x26a   :  { %v390_v1 = vpop.f32.mrb[9].mxu1 }
 0x26b   :  { %v1107_v2 = vpack.c.bf16 %v972_v62, %v390_v1 }
 0x26d   :  { %1108 = vmatpush3.bf16.msra.mxu0 %v1107_v2 }
 0x26e   :  { %1109 = vmatprep.subr.bf16.mxu0 %v1240_v57 }
 0x271   :  { %v975_v4 = vpop.f32.mrb[10].mxu1 }
 0x272   :  { %v400_v5 = vpop.f32.mrb[11].mxu1 }
 0x273   :  { %v1110_v6 = vpack.c.bf16 %v975_v4, %v400_v5 }
 0x275   :  { %1111 = vmatpush3.bf16.msra.mxu0 %v1110_v6 }
 0x276   :  { %1112 = vmatprep.subr.bf16.mxu0 %v1240_v57 }
 0x279   :  { %v978_v7 = vpop.f32.mrb[12].mxu1 }
 0x27a   :  { %v410_v8 = vpop.f32.mrb[13].mxu1 }
 0x27b   :  { %v1113_v9 = vpack.c.bf16 %v978_v7, %v410_v8 }
 0x27d   :  { %1114 = vmatpush3.bf16.msra.mxu0 %v1113_v9 }
 0x27e   :  { %1115 = vmatprep.subr.bf16.mxu0 %v1240_v57 }
 0x281   :  { %v981_v11 = vpop.f32.mrb[14].mxu1 }
 0x282   :  { %v420_v13 = vpop.f32.mrb[15].mxu1 }
 0x283   :  { %v1116_v14 = vpack.c.bf16 %v981_v11, %v420_v13 }
 0x285   :  { %1117 = vmatpush3.bf16.msra.mxu0 %v1116_v14 }
 0x286   :  { %1118 = vmatprep.subr.bf16.mxu0 %v1240_v57 }
 0x289   :  { %v984_v16 = vpop.f32.mrb[16].mxu1 }
 0x28a   :  { %v430_v17 = vpop.f32.mrb[17].mxu1 }
 0x28b   :  { %v1119_v18 = vpack.c.bf16 %v984_v16, %v430_v17 }
 0x28d   :  { %1120 = vmatpush3.bf16.msra.mxu0 %v1119_v18 }
 0x28e   :  { %1121 = vmatprep.subr.bf16.mxu0 %v1240_v57 }
 0x291   :  { %v987_v20 = vpop.f32.mrb[18].mxu1 }
 0x292   :  { %v440_v21 = vpop.f32.mrb[19].mxu1 }
 0x293   :  { %v1122_v22 = vpack.c.bf16 %v987_v20, %v440_v21 }
 0x295   :  { %1123 = vmatpush3.bf16.msra.mxu0 %v1122_v22 }
 0x296   :  { %1124 = vmatprep.subr.bf16.mxu0 %v1240_v57 }
 0x299   :  { %v990_v24 = vpop.f32.mrb[20].mxu1 }
 0x29a   :  { %v450_v26 = vpop.f32.mrb[21].mxu1 }
 0x29b   :  { %v1125_v28 = vpack.c.bf16 %v990_v24, %v450_v26 }
 0x29d   :  { %1126 = vmatpush3.bf16.msra.mxu0 %v1125_v28 }
 0x29e   :  { %1026 = vmatprep.subr.mxu0 %v1302_v37 }
 0x2a0   :  { %1024 = vmatmul.mubr.f32.vlgmr.msra.gmra.mrb[0].mxu0 %v148_v29 }
 0x2a1   :  { %1027 = vmatpush3.msra.mxu0 %v1302_v37  ;;  %1028 = vmatprep.mubr.msk.f32.mxu0 %vm265_vm1, %v546_v61 }
 0x2a4   :  { %1029 = vmatmul.mubr.msk.f32.vlgmr.msra.gmra.mrb[2].mxu0 %vm265_vm1, %v547_v63 }
 0x2a5   :  { %1031 = vmatprep.mubr.msk.f32.mxu0 %vm265_vm1, %v548_v3 }
 0x2a8   :  { %1032 = vmatmul.mubr.msk.f32.gmra.mrb[4].mxu0 %vm265_vm1, %v549_v0 }
 0x2a9   :  { %1034 = vmatprep.mubr.msk.f32.mxu0 %vm265_vm1, %v550_v10 }
 0x2ac   :  { %1035 = vmatmul.mubr.msk.f32.gmra.mrb[6].mxu0 %vm265_vm1, %v551_v12 }
 0x2ad   :  { %1037 = vmatprep.mubr.msk.f32.mxu0 %vm265_vm1, %v552_v15 }
 0x2b0   :  { %1038 = vmatmul.mubr.msk.f32.gmra.mrb[8].mxu0 %vm265_vm1, %v553_v19 }
 0x2b1   :  { %1040 = vmatprep.mubr.msk.f32.mxu0 %vm265_vm1, %v554_v23 }
 0x2b4   :  { %1041 = vmatmul.mubr.msk.f32.gmra.mrb[10].mxu0 %vm265_vm1, %v555_v25 }
 0x2b5   :  { %1043 = vmatprep.mubr.msk.f32.mxu0 %vm265_vm1, %v556_v30 }
 0x2b8   :  { %1044 = vmatmul.mubr.msk.f32.gmra.mrb[12].mxu0 %vm265_vm1, %v557_v32 }
 0x2b9   :  { %1046 = vmatprep.mubr.msk.f32.mxu0 %vm265_vm1, %v558_v34 }
 0x2bc   :  { %1047 = vmatmul.mubr.msk.f32.gmra.mrb[14].mxu0 %vm265_vm1, %v559_v27 }
 0x2bd   :  { %1049 = vmatprep.mubr.msk.f32.mxu0 %vm265_vm1, %v560_v31 }
 0x2c0   :  { %1050 = vmatmul.mubr.msk.f32.gmra.mrb[16].mxu0 %vm265_vm1, %v561_v35 }
 0x373   :  { %v525_v36 = vpop.f32.mrb[0].mxu0 }
 0x374   :  { %529 = vst [vmem:[#allocation7] sm:$0xff] %v525_v36  ;;  %v1025_v37 = vpop.f32.mrb[1].mxu0 }
 0x377   :  { %v1030_v38 = vpop.f32.mrb[2].mxu0 }
 0x378   :  { %v676_v39 = vpop.f32.mrb[3].mxu0 }
 0x379   :  { %v1128_v40 = vpack.c.bf16 %v1030_v38, %v676_v39 }
 0x37b   :  { %v1033_v41 = vpop.f32.mrb[4].mxu0  ;;  %1129 = vmatpush3.bf16.msra.mxu1 %v1128_v40 }
 0x37c   :  { %v686_v42 = vpop.f32.mrb[5].mxu0  ;;  %1130 = vmatprep.subr.bf16.mxu1 %v1240_v57 }
 0x37d   :  { %v1131_v43 = vpack.c.bf16 %v1033_v41, %v686_v42 }
 0x37f   :  { %v1036_v44 = vpop.f32.mrb[6].mxu0  ;;  %1132 = vmatpush3.bf16.msra.mxu1 %v1131_v43 }
 0x380   :  { %v696_v45 = vpop.f32.mrb[7].mxu0  ;;  %1133 = vmatprep.subr.bf16.mxu1 %v1240_v57 }
 0x381   :  { %v1134_v46 = vpack.c.bf16 %v1036_v44, %v696_v45 }
 0x383   :  { %v1039_v47 = vpop.f32.mrb[8].mxu0  ;;  %1135 = vmatpush3.bf16.msra.mxu1 %v1134_v46 }
 0x384   :  { %v706_v48 = vpop.f32.mrb[9].mxu0  ;;  %1136 = vmatprep.subr.bf16.mxu1 %v1240_v57 }
 0x385   :  { %v1137_v49 = vpack.c.bf16 %v1039_v47, %v706_v48 }
 0x387   :  { %v1042_v50 = vpop.f32.mrb[10].mxu0  ;;  %1138 = vmatpush3.bf16.msra.mxu1 %v1137_v49 }
 0x388   :  { %v716_v51 = vpop.f32.mrb[11].mxu0  ;;  %1139 = vmatprep.subr.bf16.mxu1 %v1240_v57 }
 0x389   :  { %v1140_v52 = vpack.c.bf16 %v1042_v50, %v716_v51 }
 0x38b   :  { %v1045_v53 = vpop.f32.mrb[12].mxu0  ;;  %1141 = vmatpush3.bf16.msra.mxu1 %v1140_v52 }
 0x38c   :  { %v726_v54 = vpop.f32.mrb[13].mxu0  ;;  %1142 = vmatprep.subr.bf16.mxu1 %v1240_v57 }
 0x38d   :  { %v1143_v55 = vpack.c.bf16 %v1045_v53, %v726_v54 }
 0x38f   :  { %v1048_v56 = vpop.f32.mrb[14].mxu0  ;;  %1144 = vmatpush3.bf16.msra.mxu1 %v1143_v55 }
 0x390   :  { %v736_v58 = vpop.f32.mrb[15].mxu0  ;;  %1145 = vmatprep.subr.bf16.mxu1 %v1240_v57 }
 0x391   :  { %v1146_v59 = vpack.c.bf16 %v1048_v56, %v736_v58 }
 0x393   :  { %v1051_v60 = vpop.f32.mrb[16].mxu0  ;;  %1147 = vmatpush3.bf16.msra.mxu1 %v1146_v59 }
 0x394   :  { %v746_v61 = vpop.f32.mrb[17].mxu0  ;;  %1148 = vmatprep.subr.bf16.mxu1 %v1240_v57 }
 0x395   :  { %v1149_v62 = vpack.c.bf16 %v1051_v60, %v746_v61 }
 0x397   :  { %1150 = vmatpush3.bf16.msra.mxu1 %v1149_v62 }
 0x39a   :  { %1085 = vmatmul.mubr.f32.vlgmr.msra.gmra.mrb[22].mxu1 %v1300_v33 }
 0x46d   :  { %v821_v63 = vpop.f32.mrb[22].mxu1 }
 0x46e   :  { %825 = vst [vmem:[#allocation7 + $0x8] sm:$0xff] %v821_v63  ;;  %v1086_v1 = vpop.f32.mrb[23].mxu1 }
 0x46f   :  { %1216 = shalt.err (!%p1213_p6)
}
 0x470   :  { %s1217_s17 = scalar_lea.hbm %s1377_s3, 256 }
 0x471   :  { %p1218_p7 = scmp.ne.s32.totalorder %s1377_s3, %s1217_s17  ;;  %p1221_p8 = scmp.lt.u32.totalorder %s1217_s17, %s1377_s3 }
 0x473   :  { %p1223_p9 = pnand %p1221_p8, %p1218_p7 }
 0x475   :  { %1226 = shalt.err (!%p1223_p9)
}
 0x476   :  { %837 = dma.vmem_to_hbm [thread:$0]  %s832_s13, 256, %s1377_s3, [#allocation4], %s1234_s22, %s1234_s22, %s1235_s23  }
 0x477   :  { %1231 = dma.done.wait [#allocation4], 256  }
 0x478   :  { %1232 = vsyncadd [#allocation4], 4294967040 }
 0x479   :  { %841 = vsyncpa [#allocation3], 1 }
 0x47a   :  { %842 = vsyncpa [#allocation6], 1 }
 0x47b   :  { %843 = vsyncpa [#allocation4], 1 }

</bundles_post_ra>
